<compile_context>
chip_gen: v7x
topology: tpu7x:2x2x1
jax: 0.10.0
libtpu: 0.0.40
codegen_flags: <defaults>
</compile_context>

<pallas_src>
import functools

import jax
import jax.numpy as jnp
from jax.experimental import pallas as pl
from jax.experimental.pallas import tpu as pltpu


def _round_up(x, m):
    return ((x + m - 1) // m) * m


def make_cnn_kernel(filter_sizes, n_filters, t_valid):
    """Fused conv (single matmul) + bias + ReLU + mask + max-pool kernel."""
    F = n_filters
    NEG = -999999.0  # Python float -> literal (NOT a captured jnp constant)

    def kernel(lhs_ref, mask_ref, w_ref, b_ref, out_ref):
        # lhs_ref : [Bt, T, K]  bf16  im2col windows, K = max_fs * E
        # mask_ref: [Bt, T, 1]  f32   1 = valid token, 0 = pad
        # w_ref   : [K, NF]     bf16  fused conv weights (all filter sizes)
        # b_ref   : [1, NF]     f32   fused conv bias
        # out_ref : [Bt, NF]    f32   lane-dense pooled slab
        Bt, T, K = lhs_ref.shape
        NF = w_ref.shape[1]

        lhs = lhs_ref[...].reshape(Bt * T, K)
        conv = jnp.dot(lhs, w_ref[...], preferred_element_type=jnp.float32)
        conv = jnp.maximum(conv + b_ref[...], 0.0)            # bias + ReLU (f32)
        conv = conv.reshape(Bt, T, NF)

        # keep[b, t, lane] = token t valid AND t <= T_valid - fs(group of lane).
        valid_tok = mask_ref[...] >= 0.5                      # [Bt, T, 1]
        t_idx = jax.lax.broadcasted_iota(jnp.int32, (Bt, T, 1), 1)
        lane = jax.lax.broadcasted_iota(jnp.int32, (1, 1, NF), 2)
        thr = jnp.full((1, 1, NF), -1, jnp.int32)             # unused lanes: never kept
        for g, fs in enumerate(filter_sizes):
            in_g = jnp.logical_and(lane >= g * F, lane < (g + 1) * F)
            thr = jnp.where(in_g, t_valid - fs, thr)
        keep = jnp.logical_and(valid_tok, t_idx <= thr)       # [Bt, T, NF]

        out_ref[...] = jnp.max(jnp.where(keep, conv, NEG), axis=1)

    return kernel


def prepare_params(params, filter_sizes):
    """Hoisted (once per parameter set) fusion of conv weights / bias.

    Packs every filter-size group into one 128-lane group and stacks the
    per-shift weight slices along the contraction dim: w[K=max_fs*E, NF].
    """
    filter_sizes = tuple(int(fs) for fs in filter_sizes)
    n_fs = len(filter_sizes)
    max_fs = max(filter_sizes)
    F, _, E = params["conv_w"][0].shape
    NF = max(128, _round_up(n_fs * F, 128))

    w_cols = []
    for g, fs in enumerate(filter_sizes):
        w_g = jnp.transpose(params["conv_w"][g], (1, 2, 0))   # [fs, E, F]
        if fs < max_fs:                                       # zero-pad missing shifts
            w_g = jnp.pad(w_g, ((0, max_fs - fs), (0, 0), (0, 0)))
        w_cols.append(w_g)
    w = jnp.concatenate(w_cols, axis=2)                       # [max_fs, E, n_fs*F]
    w = jnp.pad(w, ((0, 0), (0, 0), (0, NF - n_fs * F)))
    w = w.reshape(max_fs * E, NF).astype(jnp.bfloat16)        # [K, NF]

    b = jnp.concatenate([params["conv_b"][g] for g in range(n_fs)])
    b = jnp.pad(b, (0, NF - n_fs * F)).reshape(1, NF).astype(jnp.float32)

    return {
        "embedding": params["embedding"].astype(jnp.float32),
        "conv_w_fused": w,
        "conv_b_fused": b,
        "fc_w": params["fc_w"].astype(jnp.float32),
        "fc_b": params["fc_b"].astype(jnp.float32),
    }


def cnn_forward(text, mask, fused, *, filter_sizes):
    filter_sizes = tuple(int(fs) for fs in filter_sizes)
    n_fs = len(filter_sizes)
    max_fs = max(filter_sizes)

    K, NF = fused["conv_w_fused"].shape
    F = fused["fc_w"].shape[1] // n_fs                        # n_filters

    B, T = text.shape
    assert T >= max_fs, "sequence length must cover the largest filter size"

    # Glue: embedding gather + im2col window assembly stay in plain JAX.
    emb = jnp.take(fused["embedding"], text, axis=0)          # [B, T, E] f32
    win = [emb]
    for i in range(1, max_fs):
        win.append(jnp.pad(emb[:, i:, :], ((0, 0), (0, i), (0, 0))))
    lhs = jnp.stack(win, axis=2).reshape(B, T, K).astype(jnp.bfloat16)
    mask3 = mask.astype(jnp.float32).reshape(B, T, 1)

    # Pad T to a sublane multiple so the in-kernel (Bt, T, K)->(Bt*T, K) merge
    # is layout-clean; padded positions have mask 0 (position limit uses the
    # ORIGINAL T, so semantics are unchanged).
    T_pad = _round_up(T, 8)
    if T_pad != T:
        lhs = jnp.pad(lhs, ((0, 0), (0, T_pad - T), (0, 0)))
        mask3 = jnp.pad(mask3, ((0, 0), (0, T_pad - T), (0, 0)))

    # Batch tiling: big tiles to amortize per-grid-step overhead, but keep
    # >= 2 grid steps when the batch allows so both v7x TensorCores get work.
    B8 = _round_up(B, 8)
    B_tile = min(256, B8)
    if B8 >= 16:
        B_tile = min(B_tile, _round_up(B8 // 2, 8))
    B_pad = _round_up(B, B_tile)
    if B_pad != B:
        lhs = jnp.pad(lhs, ((0, B_pad - B), (0, 0), (0, 0)))
        mask3 = jnp.pad(mask3, ((0, B_pad - B), (0, 0), (0, 0)))  # pad rows: invalid

    kernel = make_cnn_kernel(filter_sizes, F, T)

    pooled = pl.pallas_call(
        kernel,
        out_shape=jax.ShapeDtypeStruct((B_pad, NF), jnp.float32),
        grid_spec=pltpu.PrefetchScalarGridSpec(
            num_scalar_prefetch=0,
            grid=(B_pad // B_tile,),
            in_specs=[
                pl.BlockSpec((B_tile, T_pad, K), lambda b: (b, 0, 0)),
                pl.BlockSpec((B_tile, T_pad, 1), lambda b: (b, 0, 0)),
                pl.BlockSpec((K, NF), lambda b: (0, 0)),
                pl.BlockSpec((1, NF), lambda b: (0, 0)),
            ],
            out_specs=pl.BlockSpec((B_tile, NF), lambda b: (b, 0)),
        ),
        compiler_params=pltpu.CompilerParams(
            dimension_semantics=("parallel",),
            vmem_limit_bytes=32 * 1024 * 1024,
        ),
    )(lhs, mask3, fused["conv_w_fused"], fused["conv_b_fused"])

    cat = pooled[:B, : n_fs * F]                              # drop batch & lane pad

    # Dropout (eval mode) == identity.  Tiny FC runs in plain JAX (f32).
    return cat @ fused["fc_w"].T + fused["fc_b"]


def reference_forward(text, mask, params, filter_sizes):
    """Pure-JAX f32 reference mirroring the PyTorch forward (eval mode)."""
    emb = jnp.take(params["embedding"], text, axis=0)          # [B, T, E]
    T = emb.shape[1]
    pooled = []
    for idx, fs in enumerate(filter_sizes):
        w = params["conv_w"][idx]                              # [F, fs, E]
        b = params["conv_b"][idx]                              # [F]
        L = T - fs + 1
        windows = jnp.stack([emb[:, i:i + L, :] for i in range(fs)], axis=2)  # [B,L,fs,E]
        conv = jnp.einsum("blie,fie->blf", windows, w) + b     # [B, L, F]
        conv = jnp.maximum(conv, 0.0)
        m = mask[:, :L]
        conv = jnp.where(m[:, :, None] >= 0.5, conv, -999999.0)
        pooled.append(jnp.max(conv, axis=1))
    cat = jnp.concatenate(pooled, axis=1)
    return cat @ params["fc_w"].T + params["fc_b"]


if __name__ == "__main__":
    # Small, deterministic config.
    vocab_size = 50
    embedding_dim = 32
    n_filters = 8
    filter_sizes = (3, 4, 5)
    output_dim = 2
    pad_idx = 0
    B, T = 2, 16

    key = jax.random.PRNGKey(0)
    keys = jax.random.split(key, 12)

    emb_table = jax.random.normal(keys[0], (vocab_size, embedding_dim), jnp.float32) * 0.1
    emb_table = emb_table.at[pad_idx].set(0.0)   # padding_idx row is zero in nn.Embedding

    conv_w = [jax.random.normal(keys[1 + i], (n_filters, fs, embedding_dim), jnp.float32) * 0.1
              for i, fs in enumerate(filter_sizes)]
    conv_b = [jax.random.normal(keys[4 + i], (n_filters,), jnp.float32) * 0.1
              for i in range(len(filter_sizes))]
    fc_w = jax.random.normal(keys[7], (output_dim, len(filter_sizes) * n_filters), jnp.float32) * 0.1
    fc_b = jax.random.normal(keys[8], (output_dim,), jnp.float32) * 0.1

    params = {
        "embedding": emb_table,
        "conv_w": conv_w,
        "conv_b": conv_b,
        "fc_w": fc_w,
        "fc_b": fc_b,
    }

    # Inputs: token ids + padding mask (1 = valid token, 0 = pad).
    text = jax.random.randint(keys[9], (B, T), 1, vocab_size, dtype=jnp.int32)
    lengths = jnp.array([T, 11], dtype=jnp.int32)
    mask = (jnp.arange(T)[None, :] < lengths[:, None]).astype(jnp.float32)
    text = jnp.where(mask > 0, text, pad_idx)

    fused = prepare_params(params, filter_sizes)               # hoisted param fusion
    forward = jax.jit(functools.partial(cnn_forward, filter_sizes=filter_sizes))

    out = forward(text, mask, fused)
    out = jax.block_until_ready(out)

    ref = reference_forward(text, mask, params, filter_sizes)
    assert out.shape == (B, output_dim)
    # Kernel path uses bf16 MXU inputs (f32 accumulation) -> loose tolerance vs f32 ref.
    assert jnp.allclose(out, ref, atol=2e-2, rtol=2e-2), (out, ref)

    print("KERNEL_OK")
</pallas_src>

<mosaic_0001>
module attributes {stable_mosaic.version = 11 : i64} {
  func.func @kernel(%arg0: i32, %arg1: memref<8x16x160xbf16, #tpu.memory_space<vmem>>, %arg2: memref<8x16x1xf32, #tpu.memory_space<vmem>>, %arg3: memref<160x128xbf16, #tpu.memory_space<vmem>>, %arg4: memref<1x128xf32, #tpu.memory_space<vmem>>, %arg5: memref<8x128xf32, #tpu.memory_space<vmem>>) attributes {dimension_semantics = [#tpu.dimension_semantics<parallel>], iteration_bounds = array<i64: 1>, scalar_prefetch = 0 : i64, scratch_operands = 0 : i64, tpu.core_type = #tpu.core_type<tc>, window_params = [{transform_indices = @transform_0, window_bounds = array<i64: 8, 16, 160>}, {transform_indices = @transform_1, window_bounds = array<i64: 8, 16, 1>}, {pipeline_mode = #tpu.pipeline_mode<synchronous>, transform_indices = @transform_2, window_bounds = array<i64: 160, 128>}, {pipeline_mode = #tpu.pipeline_mode<synchronous>, transform_indices = @transform_3, window_bounds = array<i64: 1, 128>}, {transform_indices = @transform_4, window_bounds = array<i64: 8, 128>}]} {
    %c0 = arith.constant 0 : index
    %c0_0 = arith.constant 0 : index
    %c0_1 = arith.constant 0 : index
    %0 = vector.load %arg1[%c0, %c0_0, %c0_1] : memref<8x16x160xbf16, #tpu.memory_space<vmem>>, vector<8x16x160xbf16>
    %1 = vector.shape_cast %0 : vector<8x16x160xbf16> to vector<128x160xbf16>
    %c0_2 = arith.constant 0 : index
    %c0_3 = arith.constant 0 : index
    %2 = vector.load %arg3[%c0_2, %c0_3] : memref<160x128xbf16, #tpu.memory_space<vmem>>, vector<160x128xbf16>
    %cst = arith.constant dense<0.000000e+00> : vector<128x128xf32>
    %3 = tpu.matmul %1, %2, %cst {dimension_numbers = #tpu.dot_dimension_numbers<[1], [0], [0], [1], [0, 0, 1, 1], [], []>} : vector<128x160xbf16>, vector<160x128xbf16>, vector<128x128xf32> -> vector<128x128xf32>
    %c0_4 = arith.constant 0 : index
    %c0_5 = arith.constant 0 : index
    %4 = vector.load %arg4[%c0_4, %c0_5] : memref<1x128xf32, #tpu.memory_space<vmem>>, vector<1x128xf32>
    %5 = vector.broadcast %4 : vector<1x128xf32> to vector<128x128xf32>
    %6 = arith.addf %3, %5 : vector<128x128xf32>
    %cst_6 = arith.constant 0.000000e+00 : f32
    %7 = vector.broadcast %cst_6 : f32 to vector<128x128xf32>
    %8 = arith.maximumf %6, %7 : vector<128x128xf32>
    %9 = vector.shape_cast %8 : vector<128x128xf32> to vector<8x16x128xf32>
    %c0_7 = arith.constant 0 : index
    %c0_8 = arith.constant 0 : index
    %c0_9 = arith.constant 0 : index
    %10 = vector.load %arg2[%c0_7, %c0_8, %c0_9] : memref<8x16x1xf32, #tpu.memory_space<vmem>>, vector<8x16x1xf32>
    %cst_10 = arith.constant 5.000000e-01 : f32
    %11 = vector.broadcast %cst_10 : f32 to vector<8x16x1xf32>
    %12 = arith.cmpf oge, %10, %11 : vector<8x16x1xf32>
    %13 = tpu.iota {dimensions = array<i32: 1>} : vector<8x16x1xi32>
    %14 = tpu.iota {dimensions = array<i32: 2>} : vector<1x1x128xi32>
    %c-1_i32 = arith.constant -1 : i32
    %15 = vector.broadcast %c-1_i32 : i32 to vector<1x1x128xi32>
    %c0_i32 = arith.constant 0 : i32
    %16 = vector.broadcast %c0_i32 : i32 to vector<1x1x128xi32>
    %17 = arith.cmpi sge, %14, %16 : vector<1x1x128xi32>
    %c8_i32 = arith.constant 8 : i32
    %18 = vector.broadcast %c8_i32 : i32 to vector<1x1x128xi32>
    %19 = arith.cmpi slt, %14, %18 : vector<1x1x128xi32>
    %20 = arith.andi %17, %19 : vector<1x1x128xi1>
    %c13_i32 = arith.constant 13 : i32
    %21 = vector.broadcast %c13_i32 : i32 to vector<1x1x128xi32>
    %22 = arith.select %20, %21, %15 : vector<1x1x128xi1>, vector<1x1x128xi32>
    %c8_i32_11 = arith.constant 8 : i32
    %23 = vector.broadcast %c8_i32_11 : i32 to vector<1x1x128xi32>
    %24 = arith.cmpi sge, %14, %23 : vector<1x1x128xi32>
    %c16_i32 = arith.constant 16 : i32
    %25 = vector.broadcast %c16_i32 : i32 to vector<1x1x128xi32>
    %26 = arith.cmpi slt, %14, %25 : vector<1x1x128xi32>
    %27 = arith.andi %24, %26 : vector<1x1x128xi1>
    %c12_i32 = arith.constant 12 : i32
    %28 = vector.broadcast %c12_i32 : i32 to vector<1x1x128xi32>
    %29 = arith.select %27, %28, %22 : vector<1x1x128xi1>, vector<1x1x128xi32>
    %c16_i32_12 = arith.constant 16 : i32
    %30 = vector.broadcast %c16_i32_12 : i32 to vector<1x1x128xi32>
    %31 = arith.cmpi sge, %14, %30 : vector<1x1x128xi32>
    %c24_i32 = arith.constant 24 : i32
    %32 = vector.broadcast %c24_i32 : i32 to vector<1x1x128xi32>
    %33 = arith.cmpi slt, %14, %32 : vector<1x1x128xi32>
    %34 = arith.andi %31, %33 : vector<1x1x128xi1>
    %c11_i32 = arith.constant 11 : i32
    %35 = vector.broadcast %c11_i32 : i32 to vector<1x1x128xi32>
    %36 = arith.select %34, %35, %29 : vector<1x1x128xi1>, vector<1x1x128xi32>
    %37 = vector.broadcast %13 : vector<8x16x1xi32> to vector<8x16x128xi32>
    %38 = vector.broadcast %36 : vector<1x1x128xi32> to vector<8x16x128xi32>
    %39 = arith.cmpi sle, %37, %38 : vector<8x16x128xi32>
    %40 = vector.broadcast %12 : vector<8x16x1xi1> to vector<8x16x128xi1>
    %41 = arith.andi %40, %39 : vector<8x16x128xi1>
    %cst_13 = arith.constant -9.999990e+05 : f32
    %42 = vector.broadcast %cst_13 : f32 to vector<8x16x128xf32>
    %43 = arith.select %41, %9, %42 : vector<8x16x128xi1>, vector<8x16x128xf32>
    %cst_14 = arith.constant dense<0xFF800000> : vector<8x128xf32>
    %44 = vector.multi_reduction <maximumf>, %43, %cst_14 [1] : vector<8x16x128xf32> to vector<8x128xf32>
    %c0_15 = arith.constant 0 : index
    %c0_16 = arith.constant 0 : index
    %45 = vector.load %arg5[%c0_15, %c0_16] : memref<8x128xf32, #tpu.memory_space<vmem>>, vector<8x128xf32>
    tpu.vector_store %arg5[%c0_15, %c0_16], %44 {strides = array<i32>} : memref<8x128xf32, #tpu.memory_space<vmem>>, vector<8x128xf32>,
    return
  }
  func.func @transform_0(%arg0: i32) -> (i32, i32, i32) {
    %c0_i32 = arith.constant 0 : i32
    %c0_i32_0 = arith.constant 0 : i32
    %c0_i32_1 = arith.constant 0 : i32
    return %arg0, %c0_i32, %c0_i32_0 : i32, i32, i32
  }
  func.func @transform_1(%arg0: i32) -> (i32, i32, i32) {
    %c0_i32 = arith.constant 0 : i32
    %c0_i32_0 = arith.constant 0 : i32
    %c0_i32_1 = arith.constant 0 : i32
    return %arg0, %c0_i32, %c0_i32_0 : i32, i32, i32
  }
  func.func @transform_2(%arg0: i32) -> (i32, i32) {
    %c0_i32 = arith.constant 0 : i32
    %c0_i32_0 = arith.constant 0 : i32
    %c0_i32_1 = arith.constant 0 : i32
    return %c0_i32, %c0_i32_0 : i32, i32
  }
  func.func @transform_3(%arg0: i32) -> (i32, i32) {
    %c0_i32 = arith.constant 0 : i32
    %c0_i32_0 = arith.constant 0 : i32
    %c0_i32_1 = arith.constant 0 : i32
    return %c0_i32, %c0_i32_0 : i32, i32
  }
  func.func @transform_4(%arg0: i32) -> (i32, i32) {
    %c0_i32 = arith.constant 0 : i32
    %c0_i32_0 = arith.constant 0 : i32
    return %arg0, %c0_i32 : i32, i32
  }
}

</mosaic_0001>

<bundles_post_ra>
// kernel: cnn_forward.1
= control target key start
LH: loop header
LB: loop body
LE: loop exit
PB: predicated region body
PF: predicated region fallthrough
CT: control target
= control target key end

     0   :  { %v671_v0 = vmov 0   ;;  %vm193_vm0 = vcmask 261120   ;;  %v363_v62 = vlaneseq  ;;  %s1005_s2 = inlined_call_operand.vmem [shape: bf16[160,128], index: 2, kind: input, shape index: {}]   ;;  %s1006_s0 = inlined_call_operand.vmem [shape: bf16[8,16,160], index: 0, kind: input, shape index: {}]   ;;  %s1007_s1 = inlined_call_operand.vmem [shape: f32[8,16,1], index: 1, kind: input, shape index: {}]   ;;  %s1008_s3 = inlined_call_operand.vmem [shape: f32[1,128], index: 3, kind: input, shape index: {}]   ;;  %s1009_s4 = inlined_call_operand.vmem [shape: f32[8,128], index: 4, kind: output, shape index: {}]  }
   0x1   :  { %218 = vmatprep.subr.bf16.mxu0 %v671_v0  ;;  %613 = vmatprep.subr.bf16.mxu1 %v671_v0  ;;  %v637_v1 = vld [vmem:[%s1005_s2] sm:$0xff]   ;;  %v638_v2 = vld [vmem:[%s1005_s2 + $0x8] sm:$0xff]   ;;  %v639_v3 = vld [vmem:[%s1005_s2 + $0x10] sm:$0xff]  }
   0x2   :  { %636 = vset.pattern.permute.xlu1 %v671_v0  ;;  %635 = vset.pattern.permute.xlu0 %v671_v0  ;;  %v640_v4 = vld [vmem:[%s1005_s2 + $0x18] sm:$0xff]   ;;  %v649_v5 = vld [vmem:[%s1006_s0 + $0x4] ss:$8 sps:$4 sm:$0xff]   ;;  %v333_v9 = vld [vmem:[%s1007_s1 + $0x10] sm:$0xff] }
   0x3   :  { %219 = vmatpush1.bf16.msra.mxu0 %v637_v1  ;;  %623 = vmatpush1.bf16.msra.mxu1 %v637_v1  ;;  %v652_v6 = vld [vmem:[%s1006_s0 + $0x44] ss:$8 sps:$4 sm:$0xff]   ;;  %vm349_vm1 = vcmp.ge.f32.partialorder %v333_v9, 0.5  ;;  %v334_v11 = vld [vmem:[%s1007_s1 + $0x18] sm:$0xff]  ;;  %v643_v13 = vld [vmem:[%s1005_s2 + $0x30] sm:$0xff]   ;;  %v367_v1 = vand.u32 127, %v363_v62 }
   0x4   :  { %220 = vmatprep.subr.bf16.mxu0 %v671_v0  ;;  %614 = vmatprep.subr.bf16.mxu1 %v671_v0  ;;  %v641_v7 = vld [vmem:[%s1005_s2 + $0x20] sm:$0xff]   ;;  %v642_v8 = vld [vmem:[%s1005_s2 + $0x28] sm:$0xff]   ;;  %v384_v14 = vsel %vm349_vm1, 1, %v671_v0  ;;  %vm350_vm3 = vcmp.ge.f32.partialorder %v334_v11, 0.5  ;;  %v644_v20 = vld [vmem:[%s1005_s2 + $0x38] sm:$0xff]  }
   0x5   :  { %605 = vmatprep.mubr.msk.bf16.mxu0 %vm193_vm0, %v649_v5  ;;  %609 = vmatprep.mubr.msk.bf16.mxu1 %vm193_vm0, %v652_v6  ;;  %v331_v10 = vld [vmem:[%s1007_s1] sm:$0xff]  ;;  %v332_v12 = vld [vmem:[%s1007_s1 + $0x8] sm:$0xff]  ;;  %v385_v18 = vsel %vm350_vm3, 1, %v671_v0  ;;  %v338_v21 = vld [vmem:[%s1007_s1 + $0x38] sm:$0xff]  ;;  %vm373_vm3 = vcmp.lt.s32.totalorder %v367_v1, 16  ;;  %v364_v6 = vshrl.u32 %v363_v62, 7 }
   0x6   :  { %vm347_vm2 = vcmp.ge.f32.partialorder %v331_v10, 0.5  ;;  %vm348_vm4 = vcmp.ge.f32.partialorder %v332_v12, 0.5  ;;  %v336_v16 = vld [vmem:[%s1007_s1 + $0x28] sm:$0xff]  ;;  %v335_v17 = vld [vmem:[%s1007_s1 + $0x20] sm:$0xff]  ;;  %405 = vperm.xlu1 %636, %v384_v14   ;;  %v337_v22 = vld [vmem:[%s1007_s1 + $0x30] sm:$0xff]  ;;  %vm354_vm7 = vcmp.ge.f32.partialorder %v338_v21, 0.5 }
   0x7   :  { %221 = vmatpush1.bf16.msra.mxu0 %v638_v2  ;;  %624 = vmatpush1.bf16.msra.mxu1 %v638_v2  ;;  %v382_v15 = vsel %vm347_vm2, 1, %v671_v0  ;;  %v383_v19 = vsel %vm348_vm4, 1, %v671_v0  ;;  %vm352_vm5 = vcmp.ge.f32.partialorder %v336_v16, 0.5  ;;  %vm351_vm6 = vcmp.ge.f32.partialorder %v335_v17, 0.5  ;;  %v645_v25 = vld [vmem:[%s1005_s2 + $0x40] sm:$0xff]   ;;  %v340_v26 = vld [vmem:[%s1007_s1 + $0x48] sm:$0xff] }
   0x8   :  { %222 = vmatprep.subr.bf16.mxu0 %v671_v0  ;;  %615 = vmatprep.subr.bf16.mxu1 %v671_v0  ;;  %v387_v23 = vsel %vm352_vm5, 1, %v671_v0  ;;  %v386_v24 = vsel %vm351_vm6, 1, %v671_v0  ;;  %vm353_vm8 = vcmp.ge.f32.partialorder %v337_v22, 0.5  ;;  %v339_v27 = vld [vmem:[%s1007_s1 + $0x40] sm:$0xff]  ;;  %v389_v28 = vsel %vm354_vm7, 1, %v671_v0  ;;  %v646_v30 = vld [vmem:[%s1005_s2 + $0x48] sm:$0xff]  }
   0x9   :  { %399 = vperm.xlu0 %635, %v382_v15   ;;  %v388_v29 = vsel %vm353_vm8, 1, %v671_v0  ;;  %vm356_vm9 = vcmp.ge.f32.partialorder %v340_v26, 0.5  ;;  %vm355_vm10 = vcmp.ge.f32.partialorder %v339_v27, 0.5  ;;  %v342_v31 = vld [vmem:[%s1007_s1 + $0x58] sm:$0xff]  ;;  %v341_v32 = vld [vmem:[%s1007_s1 + $0x50] sm:$0xff]  ;;  %v344_v39 = vld [vmem:[%s1007_s1 + $0x68] sm:$0xff] }
   0xa   :  { %408 = vperm.xlu1 %636, %v385_v18   ;;  %v647_v33 = vld [vmem:[%s1006_s0] ss:$8 sps:$4 sm:$0xff]   ;;  %v391_v35 = vsel %vm356_vm9, 1, %v671_v0  ;;  %v390_v36 = vsel %vm355_vm10, 1, %v671_v0  ;;  %v653_v37 = vld [vmem:[%s1006_s0 + $0x14] ss:$8 sps:$4 sm:$0xff]  }
   0xb   :  { %223 = vmatpush1.bf16.msra.mxu0 %v639_v3  ;;  %625 = vmatpush1.bf16.msra.mxu1 %v639_v3  ;;  %v650_v34 = vld [vmem:[%s1006_s0 + $0x40] ss:$8 sps:$4 sm:$0xff]   ;;  %v655_v38 = vld [vmem:[%s1006_s0 + $0x54] ss:$8 sps:$4 sm:$0xff]   ;;  %vm358_vm11 = vcmp.ge.f32.partialorder %v342_v31, 0.5  ;;  %vm357_vm12 = vcmp.ge.f32.partialorder %v341_v32, 0.5 }
   0xc   :  { %224 = vmatprep.subr.bf16.mxu0 %v671_v0  ;;  %616 = vmatprep.subr.bf16.mxu1 %v671_v0  ;;  %v343_v40 = vld [vmem:[%s1007_s1 + $0x60] sm:$0xff]  ;;  %v393_v41 = vsel %vm358_vm11, 1, %v671_v0  ;;  %v392_v42 = vsel %vm357_vm12, 1, %v671_v0  ;;  %vm360_vm13 = vcmp.ge.f32.partialorder %v344_v39, 0.5  ;;  %v346_v43 = vld [vmem:[%s1007_s1 + $0x78] sm:$0xff]  ;;  %v345_v44 = vld [vmem:[%s1007_s1 + $0x70] sm:$0xff] }
   0xd   :  { %402 = vperm.xlu0 %635, %v383_v19   ;;  %vm359_vm14 = vcmp.ge.f32.partialorder %v343_v40, 0.5  ;;  %v657_v45 = vld [vmem:[%s1006_s0 + $0x10] ss:$8 sps:$4 sm:$0xff]   ;;  %v395_v47 = vsel %vm360_vm13, 1, %v671_v0  ;;  %v659_v49 = vld [vmem:[%s1006_s0 + $0x24] ss:$8 sps:$4 sm:$0xff]  }
   0xe   :  { %414 = vperm.xlu1 %636, %v387_v23   ;;  %v658_v46 = vld [vmem:[%s1006_s0 + $0x50] ss:$8 sps:$4 sm:$0xff]   ;;  %v394_v48 = vsel %vm359_vm14, 1, %v671_v0  ;;  %v661_v50 = vld [vmem:[%s1006_s0 + $0x64] ss:$8 sps:$4 sm:$0xff]   ;;  %vm362_vm15 = vcmp.ge.f32.partialorder %v346_v43, 0.5 }
   0xf   :  { %225 = vmatpush1.bf16.msra.mxu0 %v640_v4  ;;  %626 = vmatpush1.bf16.msra.mxu1 %v640_v4  ;;  %vm361_vm1 = vcmp.ge.f32.partialorder %v345_v44, 0.5  ;;  %v397_v51 = vsel %vm362_vm15, 1, %v671_v0  ;;  %v663_v53 = vld [vmem:[%s1006_s0 + $0x20] ss:$8 sps:$4 sm:$0xff]   ;;  %v665_v55 = vld [vmem:[%s1006_s0 + $0x34] ss:$8 sps:$4 sm:$0xff]  }
  0x10   :  { %226 = vmatprep.subr.bf16.mxu0 %v671_v0  ;;  %617 = vmatprep.subr.bf16.mxu1 %v671_v0  ;;  %v396_v52 = vsel %vm361_vm1, 1, %v671_v0  ;;  %v664_v54 = vld [vmem:[%s1006_s0 + $0x60] ss:$8 sps:$4 sm:$0xff]   ;;  %v667_v56 = vld [vmem:[%s1006_s0 + $0x74] ss:$8 sps:$4 sm:$0xff]   ;;  %vm372_vm2 = vcmp.ge.s32.totalorder %v367_v1, 8 }
  0x11   :  { %411 = vperm.xlu0 %635, %v386_v24   ;;  %v669_v57 = vld [vmem:[%s1006_s0 + $0x30] ss:$8 sps:$4 sm:$0xff]   ;;  %v672_v4 = vmov 4294967295   ;;  %vm374_vm4 = vmand %vm372_vm2, %vm373_vm3  ;;  %vm376_vm5 = vcmp.ge.s32.totalorder %v367_v1, 16  ;;  %vm377_vm6 = vcmp.lt.s32.totalorder %v367_v1, 24  ;;  %v365_v11 = vadd.s32 8, %v364_v6 }
  0x12   :  { %420 = vperm.xlu1 %636, %v389_v28   ;;  %v670_v58 = vld [vmem:[%s1006_s0 + $0x70] ss:$8 sps:$4 sm:$0xff]   ;;  %vm378_vm7 = vmand %vm376_vm5, %vm377_vm6  ;;  %v889_v14 = vld [vmem:[%s1008_s3] ss:$0 sm:$0xff] }
  0x13   :  { %227 = vmatpush1.bf16.msra.mxu0 %v641_v7  ;;  %627 = vmatpush1.bf16.msra.mxu1 %v641_v7 }
  0x14   :  { %228 = vmatprep.subr.bf16.mxu0 %v671_v0  ;;  %618 = vmatprep.subr.bf16.mxu1 %v671_v0 }
  0x15   :  { %417 = vperm.xlu0 %635, %v388_v29  }
  0x16   :  { %426 = vperm.xlu1 %636, %v391_v35  }
  0x17   :  { %229 = vmatpush1.bf16.msra.mxu0 %v642_v8  ;;  %628 = vmatpush1.bf16.msra.mxu1 %v642_v8 }
  0x18   :  { %230 = vmatprep.subr.bf16.mxu0 %v671_v0  ;;  %619 = vmatprep.subr.bf16.mxu1 %v671_v0 }
  0x19   :  { %423 = vperm.xlu0 %635, %v390_v36  }
  0x1a   :  { %432 = vperm.xlu1 %636, %v393_v41  }
  0x1b   :  { %231 = vmatpush1.bf16.msra.mxu0 %v643_v13  ;;  %629 = vmatpush1.bf16.msra.mxu1 %v643_v13 }
  0x1c   :  { %232 = vmatprep.subr.bf16.mxu0 %v671_v0  ;;  %620 = vmatprep.subr.bf16.mxu1 %v671_v0 }
  0x1d   :  { %429 = vperm.xlu0 %635, %v392_v42  }
  0x1e   :  { %438 = vperm.xlu1 %636, %v395_v47  }
  0x1f   :  { %233 = vmatpush1.bf16.msra.mxu0 %v644_v20  ;;  %630 = vmatpush1.bf16.msra.mxu1 %v644_v20 }
  0x20   :  { %234 = vmatprep.subr.bf16.mxu0 %v671_v0  ;;  %621 = vmatprep.subr.bf16.mxu1 %v671_v0 }
  0x21   :  { %435 = vperm.xlu0 %635, %v394_v48  }
  0x22   :  { %444 = vperm.xlu1 %636, %v397_v51  }
  0x23   :  { %235 = vmatpush1.bf16.msra.mxu0 %v645_v25  ;;  %631 = vmatpush1.bf16.msra.mxu1 %v645_v25 }
  0x24   :  { %236 = vmatprep.subr.bf16.mxu0 %v671_v0  ;;  %622 = vmatprep.subr.bf16.mxu1 %v671_v0 }
  0x25   :  { %441 = vperm.xlu0 %635, %v396_v52  }
  0x27   :  { %237 = vmatpush1.bf16.msra.mxu0 %v646_v30  ;;  %632 = vmatpush1.bf16.msra.mxu1 %v646_v30 }
  0x2a   :  { %251 = vmatmul.mubr.bf16.vlgmr.msra.gmra.mrb[0].mxu0 %v647_v33  ;;  %283 = vmatmul.mubr.bf16.vlgmr.msra.gmra.mrb[0].mxu1 %v650_v34 }
  0x2b   :  { %606 = vmatprep.mubr.msk.bf16.mxu0 %vm193_vm0, %v653_v37  ;;  %610 = vmatprep.mubr.msk.bf16.mxu1 %vm193_vm0, %v655_v38 }
  0x32   :  { %259 = vmatmul.mubr.bf16.gmra.mrb[4].mxu0 %v657_v45  ;;  %291 = vmatmul.mubr.bf16.gmra.mrb[4].mxu1 %v658_v46 }
  0x33   :  { %607 = vmatprep.mubr.msk.bf16.mxu0 %vm193_vm0, %v659_v49  ;;  %611 = vmatprep.mubr.msk.bf16.mxu1 %vm193_vm0, %v661_v50 }
  0x3a   :  { %267 = vmatmul.mubr.bf16.gmra.mrb[8].mxu0 %v663_v53  ;;  %299 = vmatmul.mubr.bf16.gmra.mrb[8].mxu1 %v664_v54 }
  0x3b   :  { %608 = vmatprep.mubr.msk.bf16.mxu0 %vm193_vm0, %v665_v55  ;;  %612 = vmatprep.mubr.msk.bf16.mxu1 %vm193_vm0, %v667_v56  ;;  %vm369_vm0 = vcmp.lt.s32.totalorder %v367_v1, 8 }
  0x3c   :  { %v371_v5 = vsel %vm369_vm0, 13, %v672_v4 }
  0x3d   :  { %v375_v7 = vsel %vm374_vm4, 12, %v371_v5 }
  0x3e   :  { %v379_v10 = vsel %vm378_vm7, 11, %v375_v7 }
  0x3f   :  { %vm882_vm8 = vcmp.le.s32.totalorder %v364_v6, %v379_v10  ;;  %vm891_vm11 = vcmp.le.s32.totalorder %v365_v11, %v379_v10 }
  0x42   :  { %275 = vmatmul.mubr.bf16.gmra.mrb[12].mxu0 %v669_v57  ;;  %307 = vmatmul.mubr.bf16.gmra.mrb[12].mxu1 %v670_v58 }
  0x85   :  { %v870_v59 = vpop.permute.xlu1 %405 }
  0x86   :  { %vm448_vm2 = vcmp.eq.s32.totalorder %v870_v59, 1 }
  0x87   :  { %vm464_vm6 = vmand %vm448_vm2, %vm882_vm8 }
  0x88   :  { %v400_v60 = vpop.permute.xlu0 %399 }
  0x89   :  { %v872_v61 = vpop.permute.xlu1 %408  ;;  %vm446_vm9 = vcmp.eq.s32.totalorder %v400_v60, 1 }
  0x8a   :  { %vm897_vm13 = vmand %vm446_vm9, %vm882_vm8  ;;  %vm449_vm3 = vcmp.eq.s32.totalorder %v872_v61, 1 }
  0x8b   :  { %vm465_vm7 = vmand %vm449_vm3, %vm891_vm11 }
  0x8c   :  { %v403_v63 = vpop.permute.xlu0 %402 }
  0x8d   :  { %v874_v0 = vpop.permute.xlu1 %414  ;;  %vm447_vm12 = vcmp.eq.s32.totalorder %v403_v63, 1 }
  0x8e   :  { %vm463_vm1 = vmand %vm447_vm12, %vm891_vm11  ;;  %vm451_vm12 = vcmp.eq.s32.totalorder %v874_v0, 1 }
  0x90   :  { %v876_v2 = vpop.permute.xlu0 %411 }
  0x91   :  { %v878_v3 = vpop.permute.xlu1 %420 }
  0x92   :  { %vm453_vm2 = vcmp.eq.s32.totalorder %v878_v3, 1 }
  0x94   :  { %v880_v8 = vpop.permute.xlu0 %417 }
  0x95   :  { %v427_v9 = vpop.permute.xlu1 %426 }
  0x96   :  { %vm455_vm14 = vcmp.eq.s32.totalorder %v427_v9, 1 }
  0x97   :  { %vm471_vm0 = vmand %vm455_vm14, %vm891_vm11 }
  0x98   :  { %v424_v13 = vpop.permute.xlu0 %423 }
  0x99   :  { %vm454_vm10 = vcmp.eq.s32.totalorder %v424_v13, 1  ;;  %v433_v15 = vpop.permute.xlu1 %432 }
  0x9a   :  { %vm470_vm15 = vmand %vm454_vm10, %vm882_vm8  ;;  %vm457_vm4 = vcmp.eq.s32.totalorder %v433_v15, 1 }
  0x9b   :  { %vm473_vm9 = vmand %vm457_vm4, %vm891_vm11  ;;  %vm558_vm4 = vcmask 1041409  }
  0x9c   :  { %v430_v35 = vpop.permute.xlu0 %429 }
  0x9d   :  { %v912_v36 = vpop.permute.xlu1 %438  ;;  %vm456_vm5 = vcmp.eq.s32.totalorder %v430_v35, 1 }
  0x9e   :  { %vm472_vm10 = vmand %vm456_vm5, %vm882_vm8  ;;  %vm459_vm14 = vcmp.eq.s32.totalorder %v912_v36, 1  ;;  %vm452_vm5 = vcmp.eq.s32.totalorder %v880_v8, 1 }
  0x9f   :  { %vm475_vm3 = vmand %vm459_vm14, %vm891_vm11 }
  0xa0   :  { %v436_v62 = vpop.permute.xlu0 %435 }
  0xa1   :  { %v937_v63 = vpop.permute.xlu1 %444 }
  0xfd   :  { %v252_v17 = vpop.f32.mrb[0].mxu0  ;;  %v284_v18 = vpop.f32.mrb[0].mxu1 }
  0xfe   :  { %v253_v20 = vadd.f32 %v889_v14, %v252_v17  ;;  %v285_v21 = vadd.f32 %v889_v14, %v284_v18  ;;  %v254_v22 = vpop.f32.mrb[1].mxu0  ;;  %v286_v23 = vpop.f32.mrb[1].mxu1 }
  0xff   :  { %v255_v24 = vpop.f32.mrb[2].mxu0  ;;  %v287_v25 = vpop.f32.mrb[2].mxu1 }
 0x100   :  { %v315_v26 = vmax.f32 %v253_v20, 0.0  ;;  %v323_v27 = vmax.f32 %v285_v21, 0.0  ;;  %v256_v28 = vadd.f32 %v889_v14, %v255_v24  ;;  %v288_v29 = vadd.f32 %v889_v14, %v287_v25  ;;  %v257_v30 = vpop.f32.mrb[3].mxu0  ;;  %v289_v31 = vpop.f32.mrb[3].mxu1 }
 0x102   :  { %v486_v32 = vsel %vm470_vm15, %v323_v27, -999999.0  ;;  %v316_v33 = vmax.f32 %v256_v28, 0.0  ;;  %v324_v34 = vmax.f32 %v288_v29, 0.0  ;;  %v478_v37 = vsel %vm897_vm13, %v315_v26, -999999.0 }
 0x103   :  { %vm450_vm13 = vcmp.eq.s32.totalorder %v876_v2, 1  ;;  %vm458_vm15 = vcmp.eq.s32.totalorder %v436_v62, 1  ;;  %v442_v2 = vpop.permute.xlu0 %441 }
 0x104   :  { %v479_v38 = vsel %vm463_vm1, %v316_v33, -999999.0  ;;  %v487_v39 = vsel %vm471_vm0, %v324_v34, -999999.0  ;;  %vm950_vm1 = vmand %vm451_vm12, %vm891_vm11 }
 0x105   :  { %v494_v40 = vmax.f32 %v478_v37, %v479_v38  ;;  %v917_v41 = vmax.f32 %v486_v32, %v487_v39  ;;  %v260_v42 = vpop.f32.mrb[4].mxu0  ;;  %v292_v43 = vpop.f32.mrb[4].mxu1  ;;  %vm466_vm0 = vmand %vm450_vm13, %vm882_vm8 }
 0x106   :  { %v261_v44 = vadd.f32 %v889_v14, %v260_v42  ;;  %v293_v45 = vadd.f32 %v889_v14, %v292_v43  ;;  %v262_v46 = vpop.f32.mrb[5].mxu0  ;;  %v294_v47 = vpop.f32.mrb[5].mxu1  ;;  %vm468_vm12 = vmand %vm452_vm5, %vm882_vm8 }
 0x107   :  { %v495_v48 = vrot.slane %v494_v40, 4  ;;  %v263_v49 = vpop.f32.mrb[6].mxu0  ;;  %v295_v50 = vpop.f32.mrb[6].mxu1  ;;  %v523_v43 = vrot.slane %v917_v41, 4 }
 0x108   :  { %v317_v51 = vmax.f32 %v261_v44, 0.0  ;;  %v325_v52 = vmax.f32 %v293_v45, 0.0  ;;  %v264_v53 = vadd.f32 %v889_v14, %v263_v49  ;;  %v296_v54 = vadd.f32 %v889_v14, %v295_v50  ;;  %v265_v55 = vpop.f32.mrb[7].mxu0  ;;  %v297_v56 = vpop.f32.mrb[7].mxu1 }
 0x109   :  { %v496_v57 = vmax.f32 %v494_v40, %v495_v48 }
 0x10a   :  { %v318_v58 = vmax.f32 %v264_v53, 0.0  ;;  %v326_v59 = vmax.f32 %v296_v54, 0.0  ;;  %v480_v60 = vsel %vm464_vm6, %v317_v51, -999999.0  ;;  %v488_v1 = vsel %vm472_vm10, %v325_v52, -999999.0  ;;  %vm474_vm6 = vmand %vm458_vm15, %vm882_vm8 }
 0x10b   :  { %v497_v61 = vrot.slane %v496_v57, 2  ;;  %vm980_vm10 = vmand %vm453_vm2, %vm891_vm11  ;;  %vm564_vm15 = vcmask 1044484   ;;  %vm570_vm2 = vcmask 1047559  }
 0x10c   :  { %v481_v4 = vsel %vm465_vm7, %v318_v58, -999999.0  ;;  %v489_v5 = vsel %vm473_vm9, %v326_v59, -999999.0  ;;  %vm461_vm7 = vcmp.eq.s32.totalorder %v937_v63, 1  ;;  %vm460_vm9 = vcmp.eq.s32.totalorder %v442_v2, 1 }
 0x10d   :  { %v501_v6 = vmax.f32 %v480_v60, %v481_v4  ;;  %v940_v7 = vmax.f32 %v488_v1, %v489_v5  ;;  %v268_v9 = vpop.f32.mrb[8].mxu0  ;;  %v300_v10 = vpop.f32.mrb[8].mxu1  ;;  %v498_v28 = vmax.f32 %v496_v57, %v497_v61  ;;  %v524_v4 = vmax.f32 %v917_v41, %v523_v43  ;;  %vm477_vm13 = vmand %vm461_vm7, %vm891_vm11 }
 0x10e   :  { %v269_v11 = vadd.f32 %v889_v14, %v268_v9  ;;  %v301_v13 = vadd.f32 %v889_v14, %v300_v10  ;;  %v270_v15 = vpop.f32.mrb[9].mxu0  ;;  %v302_v17 = vpop.f32.mrb[9].mxu1  ;;  %vm476_vm14 = vmand %vm460_vm9, %vm882_vm8  ;;  %vm560_vm8 = vcmask 1042434   ;;  %vm562_vm11 = vcmask 1043459  }
 0x10f   :  { %v502_v18 = vrot.slane %v501_v6, 4  ;;  %v271_v19 = vpop.f32.mrb[10].mxu0  ;;  %v303_v20 = vpop.f32.mrb[10].mxu1  ;;  %v499_v36 = vrot.slane %v498_v28, 1  ;;  %v530_v49 = vrot.slane %v940_v7, 4  ;;  %v525_v17 = vrot.slane %v524_v4, 2 }
 0x110   :  { %v319_v22 = vmax.f32 %v269_v11, 0.0  ;;  %v327_v23 = vmax.f32 %v301_v13, 0.0  ;;  %v272_v24 = vadd.f32 %v889_v14, %v271_v19  ;;  %v304_v25 = vadd.f32 %v889_v14, %v303_v20  ;;  %v273_v26 = vpop.f32.mrb[11].mxu0  ;;  %v305_v27 = vpop.f32.mrb[11].mxu1 }
 0x111   :  { %v503_v29 = vmax.f32 %v501_v6, %v502_v18  ;;  %v500_v62 = vmax.f32 %v498_v28, %v499_v36  ;;  %v531_v8 = vmax.f32 %v940_v7, %v530_v49 }
 0x112   :  { %v320_v0 = vmax.f32 %v272_v24, 0.0  ;;  %v328_v30 = vmax.f32 %v304_v25, 0.0  ;;  %v482_v32 = vsel %vm466_vm0, %v319_v22, -999999.0  ;;  %v490_v33 = vsel %vm474_vm6, %v327_v23, -999999.0 }
 0x113   :  { %v504_v31 = vrot.slane %v503_v29, 2  ;;  %v532_v18 = vrot.slane %v531_v8, 2  ;;  %v526_v24 = vmax.f32 %v524_v4, %v525_v17  ;;  %vm568_vm0 = vcmask 1046534  }
 0x114   :  { %v483_v34 = vsel %vm950_vm1, %v320_v0, -999999.0  ;;  %v491_v35 = vsel %vm475_vm3, %v328_v30, -999999.0  ;;  %vm566_vm1 = vcmask 1045509  }
 0x115   :  { %v505_v37 = vmax.f32 %v503_v29, %v504_v31  ;;  %v508_v38 = vmax.f32 %v482_v32, %v483_v34  ;;  %v536_v39 = vmax.f32 %v490_v33, %v491_v35  ;;  %v276_v40 = vpop.f32.mrb[12].mxu0  ;;  %v308_v42 = vpop.f32.mrb[12].mxu1  ;;  %v533_v25 = vmax.f32 %v531_v8, %v532_v18 }
 0x116   :  { %v277_v44 = vadd.f32 %v889_v14, %v276_v40  ;;  %v309_v45 = vadd.f32 %v889_v14, %v308_v42  ;;  %v278_v46 = vpop.f32.mrb[13].mxu0  ;;  %v310_v47 = vpop.f32.mrb[13].mxu1  ;;  %v527_v2 = vrot.slane %v526_v24, 1 }
 0x117   :  { %v506_v48 = vrot.slane %v505_v37, 1  ;;  %v509_v50 = vrot.slane %v508_v38, 4  ;;  %v537_v51 = vrot.slane %v536_v39, 4  ;;  %v279_v52 = vpop.f32.mrb[14].mxu0  ;;  %v311_v53 = vpop.f32.mrb[14].mxu1  ;;  %v534_v31 = vrot.slane %v533_v25, 1 }
 0x118   :  { %v321_v55 = vmax.f32 %v277_v44, 0.0  ;;  %v329_v56 = vmax.f32 %v309_v45, 0.0  ;;  %v280_v57 = vadd.f32 %v889_v14, %v279_v52  ;;  %v312_v58 = vadd.f32 %v889_v14, %v311_v53  ;;  %v281_v59 = vpop.f32.mrb[15].mxu0  ;;  %v313_v60 = vpop.f32.mrb[15].mxu1 }
 0x119   :  { %v507_v1 = vmax.f32 %v505_v37, %v506_v48  ;;  %v510_v3 = vmax.f32 %v508_v38, %v509_v50  ;;  %v538_v10 = vmax.f32 %v536_v39, %v537_v51  ;;  %v528_v36 = vmax.f32 %v526_v24, %v527_v2 }
 0x11a   :  { %v322_v5 = vmax.f32 %v280_v57, 0.0  ;;  %v330_v61 = vmax.f32 %v312_v58, 0.0  ;;  %v484_v9 = vsel %vm468_vm12, %v321_v55, -999999.0  ;;  %v492_v11 = vsel %vm476_vm14, %v329_v56, -999999.0 }
 0x11b   :  { %v559_v14 = vsel %vm558_vm4, %v507_v1, %v500_v62  ;;  %v511_v6 = vrot.slane %v510_v3, 2  ;;  %v539_v21 = vrot.slane %v538_v10, 2  ;;  %v535_v37 = vmax.f32 %v533_v25, %v534_v31 }
 0x11c   :  { %v485_v16 = vsel %vm980_vm10, %v322_v5, -999999.0  ;;  %v493_v41 = vsel %vm477_vm13, %v330_v61, -999999.0 }
 0x11d   :  { %v512_v63 = vmax.f32 %v510_v3, %v511_v6  ;;  %v515_v13 = vmax.f32 %v484_v9, %v485_v16  ;;  %v543_v15 = vmax.f32 %v492_v11, %v493_v41  ;;  %v540_v29 = vmax.f32 %v538_v10, %v539_v21 }
 0x11f   :  { %v513_v12 = vrot.slane %v512_v63, 1  ;;  %v516_v19 = vrot.slane %v515_v13, 4  ;;  %v544_v20 = vrot.slane %v543_v15, 4  ;;  %v541_v33 = vrot.slane %v540_v29, 1 }
 0x121   :  { %v514_v22 = vmax.f32 %v512_v63, %v513_v12  ;;  %v517_v7 = vmax.f32 %v515_v13, %v516_v19  ;;  %v545_v23 = vmax.f32 %v543_v15, %v544_v20  ;;  %v542_v39 = vmax.f32 %v540_v29, %v541_v33 }
 0x123   :  { %v561_v26 = vsel %vm560_vm8, %v514_v22, %v559_v14  ;;  %v518_v27 = vrot.slane %v517_v7, 2  ;;  %v546_v28 = vrot.slane %v545_v23, 2 }
 0x125   :  { %v519_v0 = vmax.f32 %v517_v7, %v518_v27  ;;  %v547_v30 = vmax.f32 %v545_v23, %v546_v28 }
 0x127   :  { %v520_v32 = vrot.slane %v519_v0, 1  ;;  %v548_v35 = vrot.slane %v547_v30, 1 }
 0x129   :  { %v521_v34 = vmax.f32 %v519_v0, %v520_v32  ;;  %v549_v42 = vmax.f32 %v547_v30, %v548_v35 }
 0x12b   :  { %v563_v38 = vsel %vm562_vm11, %v521_v34, %v561_v26 }
 0x12c   :  { %v565_v40 = vsel %vm564_vm15, %v528_v36, %v563_v38 }
 0x12d   :  { %v567_v43 = vsel %vm566_vm1, %v535_v37, %v565_v40 }
 0x12e   :  { %v569_v44 = vsel %vm568_vm0, %v542_v39, %v567_v43 }
 0x12f   :  { %v571_v45 = vsel %vm570_vm2, %v549_v42, %v569_v44 }
 0x130   :  { %573 = vst [vmem:[%s1009_s4] sm:$0xff] %v571_v45 }

</bundles_post_ra>
